<compile_context>
chip_gen: v5e
topology: v5e:2x2
jax: 0.10.0
libtpu: 0.0.40
codegen_flags: <defaults>
</compile_context>

<pallas_src>
import functools

import jax
import jax.numpy as jnp
from jax.experimental import pallas as pl
from jax.experimental.pallas import tpu as pltpu

_NEG_PAD = -1e30  # class-column pad; exp underflows to 0, never wins the max


def _round_up(x, m):
    return (x + m - 1) // m * m


def _cdiv(a, b):
    return -(-a // b)


def _ce_label_smooth_kernel(
    logits_ref, targets_ref, out_ref, acc_ref, *,
    epsilon, num_classes, batch, tile_b, tiles_per_par,
    need_row_mask, masked_cols,
):
    p = pl.program_id(0)   # parallel (TensorCore) axis
    i = pl.program_id(1)   # arbitrary (reduction) axis

    @pl.when(i == 0)
    def _init():
        acc_ref[...] = jnp.zeros_like(acc_ref)

    xr = logits_ref[...]                                           # (tile_b, c_pad) native dtype
    # Row max in the native dtype (exact for bf16; packed VALU on v6e/v7x).
    m = jnp.max(xr, axis=1, keepdims=True).astype(jnp.float32)     # (tile_b, 1)
    x = xr.astype(jnp.float32)                                     # (tile_b, c_pad)

    # Softmax denominator: padded class columns hold -1e30 -> exp underflows to 0.
    sum_exp = jnp.sum(jnp.exp(x - m), axis=1, keepdims=True)       # (tile_b, 1)
    lse = jnp.log(sum_exp)                                         # (tile_b, 1)

    col = jax.lax.broadcasted_iota(jnp.int32, x.shape, 1)
    t_idx = targets_ref[...]                                       # (tile_b, 1) int32 (< C)
    tgt_x = jnp.sum(jnp.where(col == t_idx, x, 0.0), axis=1, keepdims=True)

    if masked_cols:
        # Only needed when C < c_pad: exclude the -1e30 pad from the raw sum.
        sum_x = jnp.sum(jnp.where(col < num_classes, x, 0.0), axis=1, keepdims=True)
    else:
        sum_x = jnp.sum(x, axis=1, keepdims=True)

    # loss_b = -(1-eps)*logp[b, t_b] - (eps/C) * sum_c logp[b, c]
    #        = -(1-eps)*(x[t]-(m+lse)) - (eps/C)*(sum_x - C*(m+lse))
    mle = m + lse
    uniform = epsilon / num_classes
    row_loss = (
        -(1.0 - epsilon) * (tgt_x - mle)
        - uniform * (sum_x - num_classes * mle)
    )                                                              # (tile_b, 1)

    if need_row_mask:
        tile_start = (p * tiles_per_par + i) * tile_b
        row = jax.lax.broadcasted_iota(jnp.int32, row_loss.shape, 0) + tile_start
        row_loss = jnp.where(row < batch, row_loss, 0.0)

    acc_ref[...] = acc_ref[...] + row_loss

    @pl.when(i == pl.num_programs(1) - 1)
    def _finalize():
        partial = jnp.sum(acc_ref[...], axis=0, keepdims=True) * (1.0 / batch)  # (1, 1)
        out_ref[...] = jnp.broadcast_to(partial[None], out_ref.shape).astype(jnp.float32)


def cross_entropy_label_smooth(
    logits,
    targets,
    *,
    epsilon,
    num_classes,
    vmem_budget_bytes=40 * 1024 * 1024,   # working-set budget (input dbl-buf + f32 temps)
    max_tile_b=4096,
    num_parallel=2,                       # 2 TensorCores on v7x; harmless elsewhere
):
    """logits: (B, C) float (f32 or bf16), targets: (B,) int class indices -> scalar f32."""
    B, C = logits.shape
    assert C == num_classes
    itemsize = jnp.dtype(logits.dtype).itemsize

    # Lane-dense class dimension (multiple of 128).
    # TODO(synk): very large vocabularies would need an online-LSE class grid;
    # here a single class tile is assumed to fit VMEM.
    c_pad = _round_up(C, 128)

    # Batch tile sized by the *f32* working set:
    #   2x double-buffered input block + ~4 full-width f32 temporaries per row.
    per_row_bytes = c_pad * (2 * itemsize + 4 * 4)
    rows = max(8, vmem_budget_bytes // per_row_bytes)
    tile_b = int(min(max_tile_b, rows, _round_up(B, 8)))
    tile_b = max(8, (tile_b // 8) * 8)

    num_tiles = _cdiv(B, tile_b)
    num_par = num_parallel if num_tiles >= num_parallel else 1
    tiles_per_par = _cdiv(num_tiles, num_par)
    b_pad = num_par * tiles_per_par * tile_b

    need_row_mask = b_pad != B
    masked_cols = c_pad != C

    x = logits
    if masked_cols:
        # Large-negative class padding: row-max and exp need no mask.
        x = jnp.pad(x, ((0, 0), (0, c_pad - C)), constant_values=_NEG_PAD)
    if need_row_mask:
        x = jnp.pad(x, ((0, b_pad - B), (0, 0)))
    targets_2d = jnp.pad(targets.astype(jnp.int32), (0, b_pad - B)).reshape(b_pad, 1)

    kernel = functools.partial(
        _ce_label_smooth_kernel,
        epsilon=float(epsilon),
        num_classes=int(num_classes),
        batch=int(B),
        tile_b=int(tile_b),
        tiles_per_par=int(tiles_per_par),
        need_row_mask=need_row_mask,
        masked_cols=masked_cols,
    )

    # VMEM budget: double-buffered input blocks + f32 temporaries + slack,
    # capped at 64 MiB so it also fits v7x's per-TC VMEM.
    block_in_bytes = tile_b * c_pad * itemsize
    temps_bytes = 4 * tile_b * c_pad * 4
    vmem_limit = int(min(64 << 20, max(32 << 20, 2 * block_in_bytes + temps_bytes + (8 << 20))))

    cost = pl.CostEstimate(
        flops=6 * b_pad * c_pad,
        transcendentals=b_pad * c_pad + b_pad,
        bytes_accessed=b_pad * c_pad * itemsize + b_pad * 4 + num_par * 8 * 128 * 4,
    )

    out = pl.pallas_call(
        kernel,
        out_shape=jax.ShapeDtypeStruct((num_par, 8, 128), jnp.float32),
        grid_spec=pltpu.PrefetchScalarGridSpec(
            num_scalar_prefetch=0,
            grid=(num_par, tiles_per_par),
            in_specs=[
                pl.BlockSpec((tile_b, c_pad),
                             lambda p, i: (p * tiles_per_par + i, 0)),   # logits tile
                pl.BlockSpec((tile_b, 1),
                             lambda p, i: (p * tiles_per_par + i, 0)),   # targets tile
            ],
            out_specs=pl.BlockSpec((1, 8, 128), lambda p, i: (p, 0, 0)), # per-core partial
            scratch_shapes=[pltpu.VMEM((tile_b, 1), jnp.float32)],       # vector accumulator
        ),
        compiler_params=pltpu.CompilerParams(
            dimension_semantics=("parallel", "arbitrary"),
            vmem_limit_bytes=vmem_limit,
        ),
        cost_estimate=cost,
    )(x, targets_2d)

    # Each per-core partial already carries the 1/B scale; sum the partials.
    return jnp.sum(out[:, 0, 0])


def _reference(logits, targets, epsilon, num_classes):
    log_probs = jax.nn.log_softmax(logits.astype(jnp.float32), axis=1)
    one_hot = jax.nn.one_hot(targets, num_classes, dtype=jnp.float32)
    t = (1.0 - epsilon) * one_hot + epsilon / num_classes
    return jnp.sum(jnp.mean(-t * log_probs, axis=0))


if __name__ == "__main__":
    epsilon = 0.1
    key = jax.random.PRNGKey(0)

    # Case 1: f32, B multiple of 8, small C (class padding with -1e30, masked sum path).
    B, C = 8, 32
    k1, k2, key = jax.random.split(key, 3)
    logits = jax.random.normal(k1, (B, C), dtype=jnp.float32)
    targets = jax.random.randint(k2, (B,), 0, C, dtype=jnp.int32)
    loss = jax.block_until_ready(
        cross_entropy_label_smooth(logits, targets, epsilon=epsilon, num_classes=C)
    )
    ref = _reference(logits, targets, epsilon, C)
    assert jnp.allclose(loss, ref, rtol=1e-5, atol=1e-5), (loss, ref)

    # Case 2: ragged batch (B not a multiple of 8) -> row-mask path.
    B, C = 10, 32
    k1, k2, key = jax.random.split(key, 3)
    logits = jax.random.normal(k1, (B, C), dtype=jnp.float32)
    targets = jax.random.randint(k2, (B,), 0, C, dtype=jnp.int32)
    loss = jax.block_until_ready(
        cross_entropy_label_smooth(logits, targets, epsilon=epsilon, num_classes=C)
    )
    ref = _reference(logits, targets, epsilon, C)
    assert jnp.allclose(loss, ref, rtol=1e-5, atol=1e-5), (loss, ref)

    # Case 3: bf16 logits, C multiple of 128 -> completely mask-free fast path,
    # bf16 row-max before the f32 upcast.
    B, C = 16, 256
    k1, k2, key = jax.random.split(key, 3)
    logits = jax.random.normal(k1, (B, C), dtype=jnp.bfloat16)
    targets = jax.random.randint(k2, (B,), 0, C, dtype=jnp.int32)
    loss = jax.block_until_ready(
        cross_entropy_label_smooth(logits, targets, epsilon=epsilon, num_classes=C)
    )
    ref = _reference(logits, targets, epsilon, C)
    assert jnp.allclose(loss, ref, rtol=1e-4, atol=1e-4), (loss, ref)

    # Case 4: multiple batch tiles + 2-way parallel split (v7x dual-TC path),
    # ragged batch and ragged classes together.
    B, C = 100, 200
    k1, k2, key = jax.random.split(key, 3)
    logits = jax.random.normal(k1, (B, C), dtype=jnp.float32)
    targets = jax.random.randint(k2, (B,), 0, C, dtype=jnp.int32)
    loss = jax.block_until_ready(
        cross_entropy_label_smooth(
            logits, targets, epsilon=epsilon, num_classes=C, max_tile_b=32
        )
    )
    ref = _reference(logits, targets, epsilon, C)
    assert jnp.allclose(loss, ref, rtol=1e-5, atol=1e-5), (loss, ref)

    print("KERNEL_OK")
</pallas_src>

<mosaic_0001>
module attributes {stable_mosaic.version = 11 : i64} {
  func.func @_ce_label_smooth_kernel(%arg0: i32, %arg1: i32, %arg2: memref<8x128xf32, #tpu.memory_space<vmem>>, %arg3: memref<8x1xi32, #tpu.memory_space<vmem>>, %arg4: memref<1x8x128xf32, #tpu.memory_space<vmem>>, %arg5: memref<8x1xf32, #tpu.memory_space<vmem>>) attributes {dimension_semantics = [#tpu.dimension_semantics<parallel>, #tpu.dimension_semantics<arbitrary>], iteration_bounds = array<i64: 1, 1>, scalar_prefetch = 0 : i64, scratch_operands = 1 : i64, tpu.core_type = #tpu.core_type<tc>, window_params = [{transform_indices = @transform_0, window_bounds = array<i64: 8, 128>}, {transform_indices = @transform_1, window_bounds = array<i64: 8, 1>}, {transform_indices = @transform_2, window_bounds = array<i64: 1, 8, 128>}]} {
    %c0_i32 = arith.constant 0 : i32
    %0 = arith.cmpi eq, %arg1, %c0_i32 : i32
    %1 = arith.extui %0 : i1 to i32
    %c0_i32_0 = arith.constant 0 : i32
    %2 = arith.cmpi ne, %1, %c0_i32_0 : i32
    scf.if %2 {
      %cst_18 = arith.constant 0.000000e+00 : f32
      %42 = vector.broadcast %cst_18 : f32 to vector<8x1xf32>
      %c0_19 = arith.constant 0 : index
      %c0_20 = arith.constant 0 : index
      %43 = vector.load %arg5[%c0_19, %c0_20] : memref<8x1xf32, #tpu.memory_space<vmem>>, vector<8x1xf32>
      tpu.vector_store %arg5[%c0_19, %c0_20], %42 {strides = array<i32>} : memref<8x1xf32, #tpu.memory_space<vmem>>, vector<8x1xf32>,
    } else {
    }
    %c0 = arith.constant 0 : index
    %c0_1 = arith.constant 0 : index
    %3 = vector.load %arg2[%c0, %c0_1] : memref<8x128xf32, #tpu.memory_space<vmem>>, vector<8x128xf32>
    %cst = arith.constant dense<0xFF800000> : vector<8xf32>
    %4 = vector.multi_reduction <maximumf>, %3, %cst [1] : vector<8x128xf32> to vector<8xf32>
    %5 = vector.shape_cast %4 : vector<8xf32> to vector<8x1xf32>
    %6 = vector.broadcast %5 : vector<8x1xf32> to vector<8x128xf32>
    %7 = arith.subf %3, %6 : vector<8x128xf32>
    %8 = math.exp %7 : vector<8x128xf32>
    %cst_2 = arith.constant dense<0.000000e+00> : vector<8xf32>
    %9 = vector.multi_reduction <add>, %8, %cst_2 [1] : vector<8x128xf32> to vector<8xf32>
    %10 = vector.shape_cast %9 : vector<8xf32> to vector<8x1xf32>
    %11 = math.log %10 : vector<8x1xf32>
    %12 = tpu.iota {dimensions = array<i32: 1>} : vector<8x128xi32>
    %c0_3 = arith.constant 0 : index
    %c0_4 = arith.constant 0 : index
    %13 = vector.load %arg3[%c0_3, %c0_4] : memref<8x1xi32, #tpu.memory_space<vmem>>, vector<8x1xi32>
    %14 = vector.broadcast %13 : vector<8x1xi32> to vector<8x128xi32>
    %15 = arith.cmpi eq, %12, %14 : vector<8x128xi32>
    %cst_5 = arith.constant 0.000000e+00 : f32
    %16 = vector.broadcast %cst_5 : f32 to vector<8x128xf32>
    %17 = arith.select %15, %3, %16 : vector<8x128xi1>, vector<8x128xf32>
    %cst_6 = arith.constant dense<0.000000e+00> : vector<8xf32>
    %18 = vector.multi_reduction <add>, %17, %cst_6 [1] : vector<8x128xf32> to vector<8xf32>
    %19 = vector.shape_cast %18 : vector<8xf32> to vector<8x1xf32>
    %c32_i32 = arith.constant 32 : i32
    %20 = vector.broadcast %c32_i32 : i32 to vector<8x128xi32>
    %21 = arith.cmpi slt, %12, %20 : vector<8x128xi32>
    %cst_7 = arith.constant 0.000000e+00 : f32
    %22 = vector.broadcast %cst_7 : f32 to vector<8x128xf32>
    %23 = arith.select %21, %3, %22 : vector<8x128xi1>, vector<8x128xf32>
    %cst_8 = arith.constant dense<0.000000e+00> : vector<8xf32>
    %24 = vector.multi_reduction <add>, %23, %cst_8 [1] : vector<8x128xf32> to vector<8xf32>
    %25 = vector.shape_cast %24 : vector<8xf32> to vector<8x1xf32>
    %26 = arith.addf %5, %11 : vector<8x1xf32>
    %27 = arith.subf %19, %26 : vector<8x1xf32>
    %cst_9 = arith.constant -0.899999976 : f32
    %28 = vector.broadcast %cst_9 : f32 to vector<8x1xf32>
    %29 = arith.mulf %28, %27 : vector<8x1xf32>
    %cst_10 = arith.constant 3.200000e+01 : f32
    %30 = vector.broadcast %cst_10 : f32 to vector<8x1xf32>
    %31 = arith.mulf %30, %26 : vector<8x1xf32>
    %32 = arith.subf %25, %31 : vector<8x1xf32>
    %cst_11 = arith.constant 3.125000e-03 : f32
    %33 = vector.broadcast %cst_11 : f32 to vector<8x1xf32>
    %34 = arith.mulf %33, %32 : vector<8x1xf32>
    %35 = arith.subf %29, %34 : vector<8x1xf32>
    %c0_12 = arith.constant 0 : index
    %c0_13 = arith.constant 0 : index
    %36 = vector.load %arg5[%c0_12, %c0_13] : memref<8x1xf32, #tpu.memory_space<vmem>>, vector<8x1xf32>
    %37 = arith.addf %36, %35 : vector<8x1xf32>
    %c0_14 = arith.constant 0 : index
    %c0_15 = arith.constant 0 : index
    %38 = vector.load %arg5[%c0_14, %c0_15] : memref<8x1xf32, #tpu.memory_space<vmem>>, vector<8x1xf32>
    tpu.vector_store %arg5[%c0_14, %c0_15], %37 {strides = array<i32>} : memref<8x1xf32, #tpu.memory_space<vmem>>, vector<8x1xf32>,
    %c0_i32_16 = arith.constant 0 : i32
    %39 = arith.cmpi eq, %arg1, %c0_i32_16 : i32
    %40 = arith.extui %39 : i1 to i32
    %c0_i32_17 = arith.constant 0 : i32
    %41 = arith.cmpi ne, %40, %c0_i32_17 : i32
    scf.if %41 {
      %c0_18 = arith.constant 0 : index
      %c0_19 = arith.constant 0 : index
      %42 = vector.load %arg5[%c0_18, %c0_19] : memref<8x1xf32, #tpu.memory_space<vmem>>, vector<8x1xf32>
      %cst_20 = arith.constant dense<0.000000e+00> : vector<1xf32>
      %43 = vector.multi_reduction <add>, %42, %cst_20 [0] : vector<8x1xf32> to vector<1xf32>
      %44 = vector.shape_cast %43 : vector<1xf32> to vector<1x1xf32>
      %cst_21 = arith.constant 1.250000e-01 : f32
      %45 = vector.broadcast %cst_21 : f32 to vector<1x1xf32>
      %46 = arith.mulf %44, %45 : vector<1x1xf32>
      %47 = vector.shape_cast %46 : vector<1x1xf32> to vector<1x1x1xf32>
      %48 = vector.shape_cast %47 : vector<1x1x1xf32> to vector<1x1x1xf32>
      %49 = vector.broadcast %48 : vector<1x1x1xf32> to vector<1x8x128xf32>
      %c0_22 = arith.constant 0 : index
      %c0_23 = arith.constant 0 : index
      %c0_24 = arith.constant 0 : index
      %50 = vector.load %arg4[%c0_22, %c0_23, %c0_24] : memref<1x8x128xf32, #tpu.memory_space<vmem>>, vector<1x8x128xf32>
      tpu.vector_store %arg4[%c0_22, %c0_23, %c0_24], %49 {strides = array<i32>} : memref<1x8x128xf32, #tpu.memory_space<vmem>>, vector<1x8x128xf32>,
    } else {
    }
    return
  }
  func.func @transform_0(%arg0: i32, %arg1: i32) -> (i32, i32) {
    %c1_i32 = arith.constant 1 : i32
    %0 = arith.muli %arg0, %c1_i32 : i32
    %1 = arith.addi %0, %arg1 : i32
    %c0_i32 = arith.constant 0 : i32
    %c0_i32_0 = arith.constant 0 : i32
    return %1, %c0_i32 : i32, i32
  }
  func.func @transform_1(%arg0: i32, %arg1: i32) -> (i32, i32) {
    %c1_i32 = arith.constant 1 : i32
    %0 = arith.muli %arg0, %c1_i32 : i32
    %1 = arith.addi %0, %arg1 : i32
    %c0_i32 = arith.constant 0 : i32
    %c0_i32_0 = arith.constant 0 : i32
    return %1, %c0_i32 : i32, i32
  }
  func.func @transform_2(%arg0: i32, %arg1: i32) -> (i32, i32, i32) {
    %c0_i32 = arith.constant 0 : i32
    %c0_i32_0 = arith.constant 0 : i32
    %c0_i32_1 = arith.constant 0 : i32
    return %arg0, %c0_i32, %c0_i32_0 : i32, i32, i32
  }
}

</mosaic_0001>

<bundles_post_ra>
// kernel: tpu_custom_call.1
= control target key start
LH: loop header
LB: loop body
LE: loop exit
PB: predicated region body
PF: predicated region fallthrough
CT: control target
= control target key end

     0   :  { %s198_s0 = inlined_call_operand.vmem [shape: f32[8,128], index: 0, kind: input, shape index: {}]   ;;  %s199_s1 = inlined_call_operand.vmem [shape: s32[8,1], index: 1, kind: input, shape index: {}]   ;;  %s200_s2 = inlined_call_operand.hbm [shape: f32[1,8,128], index: 2, kind: output, shape index: {}]  }
   0x1   :  { %v52_v0 = vld [vmem:[%s198_s0] sm:$0xff] }
   0x2   :  { %7 = vsyncpa [#allocation4], 0  ;;  %53 = vmax.xlane.f32.xlu0 %v52_v0  ;;  %v168_v1 = vmov 0   ;;  %v64_v2 = vld [vmem:[%s199_s1] sm:$0xff]  ;;  %v62_v3 = vlaneseq  ;;  %vm50_vm2 = vcmask 7168   ;;  %v169_v12 = vmov 0.0  }
   0x3   :  { %137 = vset.pattern.permute.xlu2 %v168_v1  ;;  %136 = vset.pattern.permute.xlu0 %v168_v1  ;;  %51 = vst.msk [vmem:[#allocation2] sm:$0xff] %vm50_vm2, %v169_v12  ;;  %s170_s0 = smov [#allocation3]   ;;  %s112_s15 = sshll.u32 %s200_s2, 4  ;;  %s113_s15 = int_to_ptr.hbm [resolvable:$true] %s112_s15 }
   0x4   :  { %v63_v4 = vand.u32 127, %v62_v3  ;;  %s110_s1 = sshll.u32 %s170_s0, 4  ;;  %s111_s1 = int_to_ptr.vmem [resolvable:$true] %s110_s1 }
   0x6   :  { %vm72_vm0 = vcmp.lt.s32.totalorder %v63_v4, 32 }
   0x7   :  { %v73_v5 = vsel %vm72_vm0, %v52_v0, 0.0 }
   0x8   :  { %74 = vadd.xlane.f32.xlu2 %v73_v5 }
   0xa   :  { %v83_v24 = vld [vmem:[#allocation2] sm:$0xff] }
  0x16   :  { %66 = vperm.xlu0 %136, %v64_v2  }
  0x75   :  { %v54_v6 = vpop.xlane.xlu0 %53 }
  0x76   :  { %v55_v7 = vsub.f32 %v52_v0, %v54_v6 }
  0x78   :  { %v56_v8 = vmul.f32 1.442695, %v55_v7 }
  0x7a   :  { %138 = vpow2.f32 %v56_v8 }
  0x7b   :  { %v75_v18 = vpop.xlane.xlu2 %74 }
  0x80   :  { %v139_v9 = vpop.eup %138 }
  0x81   :  { %58 = vadd.xlane.f32.xlu1 %v139_v9 }
  0x88   :  { %v67_v10 = vpop.permute.xlu0 %66 }
  0x89   :  { %vm68_vm1 = vcmp.eq.s32.totalorder %v63_v4, %v67_v10 }
  0x8a   :  { %v69_v11 = vsel %vm68_vm1, %v52_v0, 0.0 }
  0x8b   :  { %70 = vadd.xlane.f32.xlu1 %v69_v11 }
  0xf4   :  { %v59_v13 = vpop.xlane.xlu1 %58 }
  0xf5   :  { %140 = vlog2.f32 %v59_v13 }
  0xfb   :  { %v141_v14 = vpop.eup %140 }
  0xfc   :  { %v61_v15 = vmul.f32 0.6931472, %v141_v14 }
  0xfe   :  { %v76_v16 = vadd.f32 %v61_v15, %v54_v6  ;;  %v71_v17 = vpop.xlane.xlu1 %70 }
 0x100   :  { %v77_v19 = vsub.f32 %v71_v17, %v76_v16  ;;  %v79_v20 = vmul.f32 32.0, %v76_v16 }
 0x102   :  { %v80_v21 = vsub.f32 %v75_v18, %v79_v20  ;;  %v78_v22 = vmul.f32 -0.9, %v77_v19 }
 0x104   :  { %v81_v23 = vmul.f32 0.003125, %v80_v21 }
 0x106   :  { %v82_v25 = vsub.f32 %v78_v22, %v81_v23 }
 0x108   :  { %v84_v26 = vadd.f32 %v83_v24, %v82_v25 }
 0x10a   :  { %86 = vst.msk [vmem:[#allocation2] sm:$0xff] %vm50_vm2, %v84_v26 }
 0x111   :  { %v90_v27 = vld [vmem:[#allocation2] sm:$0xff] }
 0x112   :  { %v91_v28 = vsel %vm50_vm2, %v90_v27, 0.0 }
 0x113   :  { %v92_v29 = vrot.slane %v91_v28, 4 }
 0x115   :  { %v93_v30 = vadd.f32 %v92_v29, %v91_v28 }
 0x117   :  { %v94_v31 = vrot.slane %v93_v30, 2 }
 0x119   :  { %v95_v32 = vadd.f32 %v94_v31, %v93_v30 }
 0x11b   :  { %v96_v33 = vrot.slane %v95_v32, 1 }
 0x11d   :  { %v97_v34 = vadd.f32 %v96_v33, %v95_v32 }
 0x11f   :  { %v98_v35 = vmul.f32 0.125, %v97_v34 }
 0x121   :  { %101 = vperm.xlu2 %137, %v98_v35  }
 0x17b   :  { %v102_v36 = vpop.permute.xlu2 %101 }
 0x17c   :  { %104 = vst [vmem:[#allocation3] sm:$0xff] %v102_v36 }
 0x17d   :  { %115 = dma.vmem_to_hbm [thread:$0]  %s111_s1, 128, %s113_s15, [#allocation4]  }
 0x17e   :  { %166 = dma.done.wait [#allocation4], 128  }
 0x17f   :  { %167 = vsyncadd [#allocation4], 4294967168 }
 0x180   :  { %120 = vsyncpa [#allocation4], 1 }

</bundles_post_ra>
